<compile_context>
chip_gen: v7x
topology: tpu7x:2x2x1
jax: 0.10.0
libtpu: 0.0.40
codegen_flags: <defaults>
</compile_context>

<pallas_src>
import functools
import math

import jax
import jax.numpy as jnp
from jax.experimental import pallas as pl
from jax.experimental.pallas import tpu as pltpu

LANES = 128
SUBLANES = 8
MAX_BLOCK_ROWS = 4096                # (4096,128) f32 = 2 MiB per input buffer
MIN_ROWS_FOR_SPLIT = 2 * MAX_BLOCK_ROWS   # 2-TC split only when each half has >= 1 full block

ALPHA = 1.0
GAMMA = 2.0

# Neutral padding: fw*bce == 0 exactly in f32 for (logit=+40, target=1), so
# padded tail elements never bias the sum and no per-element mask is needed.
PAD_LOGIT = 40.0
PAD_TARGET = 1.0


def _focal_kernel(x_ref, t_ref, o_ref, acc_ref, *, alpha, gamma):
    step = pl.program_id(1)

    @pl.when(step == 0)
    def _():
        acc_ref[...] = jnp.zeros_like(acc_ref)

    x = x_ref[...].astype(jnp.float32)
    t = t_ref[...].astype(jnp.float32)

    # One shared exp serves both the stable BCE and the sigmoid:
    #   e   = exp(-|x|)
    #   bce = max(x,0) - x*t + log1p(e)
    #   sigmoid(x) = 1/(1+e)      if x >= 0
    #              = 1 - 1/(1+e)  if x <  0
    e = jnp.exp(-jnp.abs(x))
    bce = jnp.maximum(x, 0.0) - x * t + jnp.log1p(e)
    r = 1.0 / (1.0 + e)
    p = jnp.where(x >= 0.0, r, 1.0 - r)

    pt = p * t + (1.0 - p) * (1.0 - t)
    one_minus_pt = 1.0 - pt
    if float(gamma) == 2.0:
        fw = alpha * one_minus_pt * one_minus_pt
    else:
        fw = alpha * one_minus_pt ** gamma
    fl = fw * bce

    # Fold the tile into a single-vreg accumulator: leading-axis sum is pure
    # VPU adds (no XLU), and the accumulator RMW touches only 4 KiB.
    block_rows = fl.shape[0]
    acc_ref[...] += fl.reshape(block_rows // SUBLANES, SUBLANES, LANES).sum(axis=0)

    @pl.when(step == pl.num_programs(1) - 1)
    def _():
        o_ref[...] = acc_ref[...]


def _round_up(a, b):
    return -(-a // b) * b


def _sublane_align(dtype):
    # Sub-32-bit dtypes pack along sublanes: f32 -> 8, bf16 -> 16, int8/fp8 -> 32.
    itemsize = jnp.dtype(dtype).itemsize
    return SUBLANES * max(1, 4 // itemsize)


@functools.partial(jax.jit, static_argnames=("alpha", "gamma"))
def focal_loss(logits, targets, alpha=ALPHA, gamma=GAMMA):
    """Pallas forward of FocalLoss4 with reduction='mean'."""
    assert logits.shape == targets.shape
    n = int(math.prod(logits.shape))

    row_align = max(_sublane_align(logits.dtype), _sublane_align(targets.dtype))

    rows = _round_up(pl.cdiv(n, LANES), row_align)
    num_splits = 2 if rows >= MIN_ROWS_FOR_SPLIT else 1   # megacore split (v7x)
    rows_per_split = _round_up(pl.cdiv(rows, num_splits), row_align)
    block_rows = min(rows_per_split, MAX_BLOCK_ROWS)
    steps = pl.cdiv(rows_per_split, block_rows)
    total_rows = num_splits * steps * block_rows
    pad = total_rows * LANES - n

    x_flat = jnp.ravel(logits)
    t_flat = jnp.ravel(targets)
    if pad:
        # TODO(synk): for very large unaligned inputs, run the aligned prefix
        # through the kernel and the tiny tail in plain JAX to avoid this copy.
        x_flat = jnp.pad(x_flat, (0, pad), constant_values=PAD_LOGIT)
        t_flat = jnp.pad(t_flat, (0, pad), constant_values=PAD_TARGET)
    x2d = x_flat.reshape(total_rows, LANES)
    t2d = t_flat.reshape(total_rows, LANES)

    kernel = functools.partial(_focal_kernel, alpha=float(alpha), gamma=float(gamma))

    bytes_in = (jnp.dtype(logits.dtype).itemsize
                + jnp.dtype(targets.dtype).itemsize)
    cost = pl.CostEstimate(
        flops=20 * total_rows * LANES,
        transcendentals=3 * total_rows * LANES,   # exp, log1p, divide
        bytes_accessed=bytes_in * total_rows * LANES
                       + num_splits * SUBLANES * LANES * 4,
    )

    partials = pl.pallas_call(
        kernel,
        out_shape=jax.ShapeDtypeStruct((num_splits, SUBLANES, LANES), jnp.float32),
        grid_spec=pltpu.PrefetchScalarGridSpec(
            num_scalar_prefetch=0,
            grid=(num_splits, steps),
            in_specs=[
                pl.BlockSpec((block_rows, LANES), lambda c, i: (c * steps + i, 0)),
                pl.BlockSpec((block_rows, LANES), lambda c, i: (c * steps + i, 0)),
            ],
            out_specs=pl.BlockSpec((None, SUBLANES, LANES), lambda c, i: (c, 0, 0)),
            scratch_shapes=[pltpu.VMEM((SUBLANES, LANES), jnp.float32)],
        ),
        compiler_params=pltpu.CompilerParams(
            dimension_semantics=("parallel", "arbitrary"),
        ),
        cost_estimate=cost,
    )(x2d, t2d)

    return jnp.sum(partials) / jnp.float32(n)


def focal_loss_ref(logits, targets, alpha=ALPHA, gamma=GAMMA):
    x = logits.astype(jnp.float32)
    t = targets.astype(jnp.float32)
    p = jax.nn.sigmoid(x)
    pt = p * t + (1.0 - p) * (1.0 - t)
    fw = alpha * (1.0 - pt) ** gamma
    bce = jnp.maximum(x, 0.0) - x * t + jnp.log1p(jnp.exp(-jnp.abs(x)))
    return jnp.mean(fw * bce)


if __name__ == "__main__":
    key = jax.random.PRNGKey(0)
    k1, k2 = jax.random.split(key)
    # Shapes consistent with the module's typical use: NCHW (2, 4, 16, 16).
    logits = jax.random.normal(k1, (2, 4, 16, 16), dtype=jnp.float32)
    targets = (jax.random.uniform(k2, (2, 4, 16, 16)) > 0.5).astype(jnp.float32)

    loss = jax.block_until_ready(focal_loss(logits, targets))
    ref = jax.block_until_ready(focal_loss_ref(logits, targets))

    assert jnp.allclose(loss, ref, rtol=2e-5, atol=2e-6), (loss, ref)
    print("KERNEL_OK")
</pallas_src>

<mosaic_0001>
module attributes {stable_mosaic.version = 11 : i64} {
  func.func @_focal_kernel(%arg0: i32, %arg1: i32, %arg2: memref<16x128xf32, #tpu.memory_space<vmem>>, %arg3: memref<16x128xf32, #tpu.memory_space<vmem>>, %arg4: memref<1x8x128xf32, #tpu.memory_space<vmem>>, %arg5: memref<8x128xf32, #tpu.memory_space<vmem>>) attributes {dimension_semantics = [#tpu.dimension_semantics<parallel>, #tpu.dimension_semantics<arbitrary>], iteration_bounds = array<i64: 1, 1>, scalar_prefetch = 0 : i64, scratch_operands = 1 : i64, tpu.core_type = #tpu.core_type<tc>, window_params = [{transform_indices = @transform_0, window_bounds = array<i64: 16, 128>}, {transform_indices = @transform_1, window_bounds = array<i64: 16, 128>}, {transform_indices = @transform_2, window_bounds = array<i64: 1, 8, 128>}]} {
    %c0_i32 = arith.constant 0 : i32
    %0 = arith.cmpi eq, %arg1, %c0_i32 : i32
    %1 = arith.extui %0 : i1 to i32
    %c0_i32_0 = arith.constant 0 : i32
    %2 = arith.cmpi ne, %1, %c0_i32_0 : i32
    scf.if %2 {
      %cst_20 = arith.constant 0.000000e+00 : f32
      %45 = vector.broadcast %cst_20 : f32 to vector<8x128xf32>
      %c0_21 = arith.constant 0 : index
      %c0_22 = arith.constant 0 : index
      %46 = vector.load %arg5[%c0_21, %c0_22] : memref<8x128xf32, #tpu.memory_space<vmem>>, vector<8x128xf32>
      tpu.vector_store %arg5[%c0_21, %c0_22], %45 {strides = array<i32>} : memref<8x128xf32, #tpu.memory_space<vmem>>, vector<8x128xf32>,
    } else {
    }
    %c0 = arith.constant 0 : index
    %c0_1 = arith.constant 0 : index
    %3 = vector.load %arg2[%c0, %c0_1] : memref<16x128xf32, #tpu.memory_space<vmem>>, vector<16x128xf32>
    %c0_2 = arith.constant 0 : index
    %c0_3 = arith.constant 0 : index
    %4 = vector.load %arg3[%c0_2, %c0_3] : memref<16x128xf32, #tpu.memory_space<vmem>>, vector<16x128xf32>
    %5 = math.absf %3 : vector<16x128xf32>
    %cst = arith.constant 0.000000e+00 : f32
    %6 = vector.broadcast %cst : f32 to vector<16x128xf32>
    %7 = arith.subf %6, %5 : vector<16x128xf32>
    %8 = math.exp %7 : vector<16x128xf32>
    %cst_4 = arith.constant 0.000000e+00 : f32
    %9 = vector.broadcast %cst_4 : f32 to vector<16x128xf32>
    %10 = arith.maximumf %3, %9 : vector<16x128xf32>
    %11 = arith.mulf %3, %4 : vector<16x128xf32>
    %12 = arith.subf %10, %11 : vector<16x128xf32>
    %13 = math.log1p %8 : vector<16x128xf32>
    %14 = arith.addf %12, %13 : vector<16x128xf32>
    %cst_5 = arith.constant 1.000000e+00 : f32
    %15 = vector.broadcast %cst_5 : f32 to vector<16x128xf32>
    %16 = arith.addf %15, %8 : vector<16x128xf32>
    %cst_6 = arith.constant 1.000000e+00 : f32
    %17 = vector.broadcast %cst_6 : f32 to vector<16x128xf32>
    %18 = arith.divf %17, %16 : vector<16x128xf32>
    %cst_7 = arith.constant 0.000000e+00 : f32
    %19 = vector.broadcast %cst_7 : f32 to vector<16x128xf32>
    %20 = arith.cmpf oge, %3, %19 : vector<16x128xf32>
    %cst_8 = arith.constant 1.000000e+00 : f32
    %21 = vector.broadcast %cst_8 : f32 to vector<16x128xf32>
    %22 = arith.subf %21, %18 : vector<16x128xf32>
    %23 = arith.select %20, %18, %22 : vector<16x128xi1>, vector<16x128xf32>
    %24 = arith.mulf %23, %4 : vector<16x128xf32>
    %cst_9 = arith.constant 1.000000e+00 : f32
    %25 = vector.broadcast %cst_9 : f32 to vector<16x128xf32>
    %26 = arith.subf %25, %23 : vector<16x128xf32>
    %cst_10 = arith.constant 1.000000e+00 : f32
    %27 = vector.broadcast %cst_10 : f32 to vector<16x128xf32>
    %28 = arith.subf %27, %4 : vector<16x128xf32>
    %29 = arith.mulf %26, %28 : vector<16x128xf32>
    %30 = arith.addf %24, %29 : vector<16x128xf32>
    %cst_11 = arith.constant 1.000000e+00 : f32
    %31 = vector.broadcast %cst_11 : f32 to vector<16x128xf32>
    %32 = arith.subf %31, %30 : vector<16x128xf32>
    %cst_12 = arith.constant 1.000000e+00 : f32
    %33 = vector.broadcast %cst_12 : f32 to vector<16x128xf32>
    %34 = arith.mulf %33, %32 : vector<16x128xf32>
    %35 = arith.mulf %34, %32 : vector<16x128xf32>
    %36 = arith.mulf %35, %14 : vector<16x128xf32>
    %c0_13 = arith.constant 0 : index
    %c0_14 = arith.constant 0 : index
    %37 = vector.load %arg5[%c0_13, %c0_14] : memref<8x128xf32, #tpu.memory_space<vmem>>, vector<8x128xf32>
    %38 = vector.shape_cast %36 : vector<16x128xf32> to vector<2x8x128xf32>
    %cst_15 = arith.constant dense<0.000000e+00> : vector<8x128xf32>
    %39 = vector.multi_reduction <add>, %38, %cst_15 [0] : vector<2x8x128xf32> to vector<8x128xf32>
    %40 = arith.addf %37, %39 : vector<8x128xf32>
    %c0_16 = arith.constant 0 : index
    %c0_17 = arith.constant 0 : index
    %41 = vector.load %arg5[%c0_16, %c0_17] : memref<8x128xf32, #tpu.memory_space<vmem>>, vector<8x128xf32>
    tpu.vector_store %arg5[%c0_16, %c0_17], %40 {strides = array<i32>} : memref<8x128xf32, #tpu.memory_space<vmem>>, vector<8x128xf32>,
    %c0_i32_18 = arith.constant 0 : i32
    %42 = arith.cmpi eq, %arg1, %c0_i32_18 : i32
    %43 = arith.extui %42 : i1 to i32
    %c0_i32_19 = arith.constant 0 : i32
    %44 = arith.cmpi ne, %43, %c0_i32_19 : i32
    scf.if %44 {
      %c0_20 = arith.constant 0 : index
      %c0_21 = arith.constant 0 : index
      %45 = vector.load %arg5[%c0_20, %c0_21] : memref<8x128xf32, #tpu.memory_space<vmem>>, vector<8x128xf32>
      %c0_22 = arith.constant 0 : index
      %c0_23 = arith.constant 0 : index
      %c0_24 = arith.constant 0 : index
      %46 = vector.load %arg4[%c0_22, %c0_23, %c0_24] : memref<1x8x128xf32, #tpu.memory_space<vmem>>, vector<1x8x128xf32>
      %47 = vector.shape_cast %46 : vector<1x8x128xf32> to vector<8x128xf32>
      %48 = vector.shape_cast %45 : vector<8x128xf32> to vector<1x8x128xf32>
      tpu.vector_store %arg4[%c0_22, %c0_23, %c0_24], %48 {strides = array<i32>} : memref<1x8x128xf32, #tpu.memory_space<vmem>>, vector<1x8x128xf32>,
    } else {
    }
    return
  }
  func.func @transform_0(%arg0: i32, %arg1: i32) -> (i32, i32) {
    %c1_i32 = arith.constant 1 : i32
    %0 = arith.muli %arg0, %c1_i32 : i32
    %1 = arith.addi %0, %arg1 : i32
    %c0_i32 = arith.constant 0 : i32
    %c0_i32_0 = arith.constant 0 : i32
    return %1, %c0_i32 : i32, i32
  }
  func.func @transform_1(%arg0: i32, %arg1: i32) -> (i32, i32) {
    %c1_i32 = arith.constant 1 : i32
    %0 = arith.muli %arg0, %c1_i32 : i32
    %1 = arith.addi %0, %arg1 : i32
    %c0_i32 = arith.constant 0 : i32
    %c0_i32_0 = arith.constant 0 : i32
    return %1, %c0_i32 : i32, i32
  }
  func.func @transform_2(%arg0: i32, %arg1: i32) -> (i32, i32, i32) {
    %c0_i32 = arith.constant 0 : i32
    %c0_i32_0 = arith.constant 0 : i32
    %c0_i32_1 = arith.constant 0 : i32
    return %arg0, %c0_i32, %c0_i32_0 : i32, i32, i32
  }
}

</mosaic_0001>

<bundles_post_ra>
// kernel: focal_loss.1
= control target key start
LH: loop header
LB: loop body
LE: loop exit
PB: predicated region body
PF: predicated region fallthrough
CT: control target
= control target key end

     0   :  { %s199_s0 = inlined_call_operand.vmem [shape: f32[16,128], index: 0, kind: input, shape index: {}]   ;;  %s200_s1 = inlined_call_operand.vmem [shape: f32[16,128], index: 1, kind: input, shape index: {}]   ;;  %s201_s2 = inlined_call_operand.vmem [shape: f32[1,8,128], index: 2, kind: output, shape index: {}]  }
   0x1   :  { %v60_v0 = vld [vmem:[%s199_s0] sm:$0xff]  ;;  %v61_v1 = vld [vmem:[%s199_s0 + $0x8] sm:$0xff] }
   0x2   :  { %v64_v2 = vand.u32 2147483647, %v60_v0  ;;  %v65_v3 = vand.u32 2147483647, %v61_v1  ;;  %v62_v17 = vld [vmem:[%s200_s1] sm:$0xff]  ;;  %v63_v18 = vld [vmem:[%s200_s1 + $0x8] sm:$0xff] }
   0x3   :  { %v72_v22 = vmax.f32 %v60_v0, 0.0  ;;  %v73_v23 = vmax.f32 %v61_v1, 0.0  ;;  %v74_v24 = vmul.f32 %v62_v17, %v60_v0  ;;  %vm104_vm0 = vcmp.ge.f32.partialorder %v60_v0, 0.0 }
   0x4   :  { %v66_v4 = vsub.f32 0.0, %v64_v2  ;;  %v67_v5 = vsub.f32 0.0, %v65_v3  ;;  %v75_v26 = vmul.f32 %v63_v18, %v61_v1  ;;  %vm105_vm1 = vcmp.ge.f32.partialorder %v61_v1, 0.0 }
   0x5   :  { %v114_v31 = vsub.f32 1.0, %v62_v17  ;;  %v115_v32 = vsub.f32 1.0, %v63_v18  ;;  %v76_v43 = vsub.f32 %v72_v22, %v74_v24 }
   0x6   :  { %v68_v6 = vmul.f32 1.442695, %v66_v4  ;;  %v70_v7 = vmul.f32 1.442695, %v67_v5  ;;  %v77_v45 = vsub.f32 %v73_v23, %v75_v26 }
   0x8   :  { %151 = vpow2.f32 %v68_v6 }
   0x9   :  { %153 = vpow2.f32 %v70_v7 }
  0x12   :  { %v152_v8 = vpop.eup %151 }
  0x13   :  { %v154_v9 = vpop.eup %153  ;;  %v78_v10 = vadd.f32 1.0, %v152_v8  ;;  %v81_v12 = vmul.f32 -0.5, %v152_v8  ;;  %v84_v15 = vand.u32 2147483647, %v152_v8 }
  0x14   :  { %v87_v11 = vadd.f32 1.0, %v154_v9  ;;  %v90_v13 = vmul.f32 -0.5, %v154_v9  ;;  %v93_v27 = vand.u32 2147483647, %v154_v9 }
  0x15   :  { %155 = vlog2.f32 %v78_v10  ;;  %v82_v19 = vadd.f32 1.0, %v81_v12  ;;  %vm190_vm2 = vcmp.lt.f32.partialorder %v84_v15, 0.0004427343 }
  0x16   :  { %157 = vlog2.f32 %v87_v11  ;;  %v91_v20 = vadd.f32 1.0, %v90_v13  ;;  %vm94_vm3 = vcmp.lt.f32.partialorder %v93_v27, 0.0004427343 }
  0x17   :  { %159 = vrcp.f32 %v78_v10  ;;  %v83_v34 = vmul.f32 %v152_v8, %v82_v19 }
  0x18   :  { %161 = vrcp.f32 %v87_v11  ;;  %v92_v35 = vmul.f32 %v154_v9, %v91_v20 }
  0x1f   :  { %v156_v14 = vpop.eup %155 }
  0x20   :  { %v158_v16 = vpop.eup %157  ;;  %v80_v33 = vmul.f32 0.6931472, %v156_v14 }
  0x21   :  { %v160_v21 = vpop.eup %159  ;;  %v89_v37 = vmul.f32 0.6931472, %v158_v16 }
  0x22   :  { %v162_v25 = vpop.eup %161  ;;  %v106_v28 = vsub.f32 1.0, %v160_v21  ;;  %v86_v46 = vsel %vm190_vm2, %v83_v34, %v80_v33 }
  0x23   :  { %v107_v30 = vsub.f32 1.0, %v162_v25  ;;  %v95_v48 = vsel %vm94_vm3, %v92_v35, %v89_v37  ;;  %v96_v51 = vadd.f32 %v86_v46, %v76_v43 }
  0x24   :  { %v108_v36 = vsel %vm104_vm0, %v160_v21, %v106_v28  ;;  %v97_v53 = vadd.f32 %v95_v48, %v77_v45 }
  0x25   :  { %v109_v38 = vsel %vm105_vm1, %v162_v25, %v107_v30  ;;  %v110_v39 = vmul.f32 %v108_v36, %v62_v17  ;;  %v112_v40 = vsub.f32 1.0, %v108_v36 }
  0x26   :  { %v111_v41 = vmul.f32 %v109_v38, %v63_v18  ;;  %v113_v42 = vsub.f32 1.0, %v109_v38 }
  0x27   :  { %v116_v44 = vmul.f32 %v114_v31, %v112_v40 }
  0x28   :  { %v117_v47 = vmul.f32 %v115_v32, %v113_v42 }
  0x29   :  { %v118_v49 = vadd.f32 %v116_v44, %v110_v39 }
  0x2a   :  { %v119_v50 = vadd.f32 %v117_v47, %v111_v41 }
  0x2b   :  { %v120_v52 = vsub.f32 1.0, %v118_v49 }
  0x2c   :  { %v121_v54 = vsub.f32 1.0, %v119_v50 }
  0x2d   :  { %v122_v55 = vmul.f32 %v120_v52, %v120_v52 }
  0x2e   :  { %v123_v56 = vmul.f32 %v121_v54, %v121_v54 }
  0x2f   :  { %v124_v57 = vmul.f32 %v122_v55, %v96_v51 }
  0x30   :  { %v125_v58 = vmul.f32 %v123_v56, %v97_v53 }
  0x32   :  { %v127_v59 = vadd.f32 %v125_v58, %v124_v57 }
  0x34   :  { %134 = vst [vmem:[%s201_s2] sm:$0xff] %v127_v59 }

</bundles_post_ra>
